<compile_context>
chip_gen: v7x
topology: tpu7x:2x2x1
jax: 0.10.0
libtpu: 0.0.40
codegen_flags: <defaults>
</compile_context>

<pallas_src>
import jax
import jax.numpy as jnp
from jax.experimental import pallas as pl
from jax.experimental.pallas import tpu as pltpu

LANES = 128
SUBLANES = 8
_DEG2RAD = float(jnp.pi) / 180.0


def _second_harmonic_kernel(p_ref, x_ref, o1_ref, o2_ref):
    # p_ref holds [a, b, c] in SMEM via scalar prefetch.
    a = p_ref[0]
    b = p_ref[1]
    c = p_ref[2]

    # Upcast inside the kernel; HBM traffic stays in the I/O dtype.
    t = x_ref[...].astype(jnp.float32) * jnp.float32(_DEG2RAD) - b

    # cos(2t)*cos(t) == (2*cos t)*(cos t)^2 - cos t  -> single cosine/element.
    ct = jnp.cos(t)
    y = (2.0 * ct) * (ct * ct) - ct

    o1_ref[...] = (a * jnp.abs(y + c)).astype(o1_ref.dtype)
    o2_ref[...] = (a * y + c).astype(o2_ref.dtype)


def second_harmonic_fun(x, a, b, c, *, tile_rows=1024):
    """Pallas implementation of SecondHarmonicFun.forward.

    x: arbitrary-shape array of angles in degrees (e.g. NCHW).
    a, b, c: shape-(1,) float32 parameters.
    Returns (out1, out2) with the same shape as x.
    """
    orig_shape = x.shape
    orig_dtype = x.dtype

    # Kernel I/O dtype: keep f32/bf16 as-is, promote everything else to f32
    # (matches torch's promotion for non-float inputs).
    if orig_dtype in (jnp.float32, jnp.bfloat16):
        io_dtype = orig_dtype
    else:
        io_dtype = jnp.float32

    x_flat = x.reshape(-1)
    if x_flat.dtype != io_dtype:
        x_flat = x_flat.astype(io_dtype)
    n = x_flat.shape[0]

    # Fast path: 128-aligned element counts need no padded copy at all.
    n_pad = (-n) % LANES
    if n_pad:
        x_flat = jnp.pad(x_flat, (0, n_pad))
    m = (n + n_pad) // LANES
    x2d = x_flat.reshape(m, LANES)

    itemsize = jnp.dtype(io_dtype).itemsize
    sub = SUBLANES * max(1, 4 // itemsize)  # 8 rows f32, 16 rows bf16

    # Tile sizing: lane-dense blocks, capped so the grid has >= ~8 steps when
    # the array is big enough (pipelining everywhere; >=2 steps/TC on v7x).
    tr = min(int(tile_rows), m)
    if m >= 2 * sub:
        target_steps = min(8, m // sub)
        cap = max(sub, (pl.cdiv(m, target_steps) // sub) * sub)
        tr = min(tr, cap)
    if tr < m and tr % sub:
        tr = max(sub, (tr // sub) * sub)

    grid = (pl.cdiv(m, tr),)
    blk = pl.BlockSpec((tr, LANES), lambda i, p: (i, 0))

    cost = pl.CostEstimate(
        flops=12 * n,                     # affine + cubic + abs/adds per elem
        transcendentals=n,                # one cosine per element
        bytes_accessed=3 * itemsize * n,  # 1 read + 2 writes, in io_dtype
    )

    params = jnp.concatenate([
        jnp.asarray(a, jnp.float32).reshape(-1),
        jnp.asarray(b, jnp.float32).reshape(-1),
        jnp.asarray(c, jnp.float32).reshape(-1),
    ])  # shape (3,) -> single SMEM prefetch DMA

    out1, out2 = pl.pallas_call(
        _second_harmonic_kernel,
        out_shape=(
            jax.ShapeDtypeStruct((m, LANES), io_dtype),
            jax.ShapeDtypeStruct((m, LANES), io_dtype),
        ),
        grid_spec=pltpu.PrefetchScalarGridSpec(
            num_scalar_prefetch=1,
            grid=grid,
            in_specs=[blk],
            out_specs=(blk, blk),
        ),
        compiler_params=pltpu.CompilerParams(
            dimension_semantics=("parallel",),
        ),
        cost_estimate=cost,
    )(params, x2d)

    if n_pad:
        out1 = out1.reshape(-1)[:n]
        out2 = out2.reshape(-1)[:n]
    out1 = out1.reshape(orig_shape)
    out2 = out2.reshape(orig_shape)

    # Rare path (e.g. f16 input): restore the original floating dtype.
    if jnp.issubdtype(orig_dtype, jnp.floating) and orig_dtype != io_dtype:
        out1 = out1.astype(orig_dtype)
        out2 = out2.astype(orig_dtype)
    return out1, out2


def _reference(x, a, b, c):
    xr = jnp.deg2rad(x.astype(jnp.float32))
    y = jnp.cos(2.0 * (xr - b)) * jnp.cos(xr - b)
    return a * jnp.abs(y + c), a * y + c


if __name__ == "__main__":
    key = jax.random.PRNGKey(0)
    kx, ka, kb, kc = jax.random.split(key, 4)

    # Small NCHW-like input of angles in degrees (2048 elems -> aligned path).
    x = jax.random.uniform(kx, (2, 4, 16, 16), jnp.float32) * 360.0

    # torch.rand(1)-style scalar parameters.
    a = jax.random.uniform(ka, (1,), jnp.float32)
    b = jax.random.uniform(kb, (1,), jnp.float32)
    c = jax.random.uniform(kc, (1,), jnp.float32)

    # 1) f32, 128-aligned fast path (grid of 2 blocks).
    out1, out2 = second_harmonic_fun(x, a, b, c)
    jax.block_until_ready((out1, out2))
    ref1, ref2 = _reference(x, a, b, c)
    assert out1.shape == x.shape and out2.shape == x.shape
    assert jnp.allclose(out1, ref1, atol=1e-5, rtol=1e-5)
    assert jnp.allclose(out2, ref2, atol=1e-5, rtol=1e-5)

    # 2) f32, non-128-aligned shape (exercises pad/slice fallback path).
    x_odd = jax.random.uniform(kx, (3, 5, 7), jnp.float32) * 360.0
    o1, o2 = second_harmonic_fun(x_odd, a, b, c)
    jax.block_until_ready((o1, o2))
    r1, r2 = _reference(x_odd, a, b, c)
    assert o1.shape == x_odd.shape and o2.shape == x_odd.shape
    assert jnp.allclose(o1, r1, atol=1e-5, rtol=1e-5)
    assert jnp.allclose(o2, r2, atol=1e-5, rtol=1e-5)

    # 3) bf16 I/O path (native-dtype streaming, f32 compute inside kernel).
    x_bf = x.astype(jnp.bfloat16)
    b1, b2 = second_harmonic_fun(x_bf, a, b, c)
    jax.block_until_ready((b1, b2))
    rb1, rb2 = _reference(x_bf, a, b, c)
    assert b1.dtype == jnp.bfloat16 and b2.dtype == jnp.bfloat16
    assert jnp.allclose(b1.astype(jnp.float32), rb1, atol=3e-2, rtol=3e-2)
    assert jnp.allclose(b2.astype(jnp.float32), rb2, atol=3e-2, rtol=3e-2)

    print("KERNEL_OK")
</pallas_src>

<mosaic_0001>
module attributes {stable_mosaic.version = 11 : i64} {
  func.func @_second_harmonic_kernel(%arg0: i32, %arg1: memref<3xf32, #tpu.memory_space<smem>>, %arg2: memref<8x128xf32, #tpu.memory_space<vmem>>, %arg3: memref<8x128xf32, #tpu.memory_space<vmem>>, %arg4: memref<8x128xf32, #tpu.memory_space<vmem>>) attributes {dimension_semantics = [#tpu.dimension_semantics<parallel>], iteration_bounds = array<i64: 2>, scalar_prefetch = 1 : i64, scratch_operands = 0 : i64, tpu.core_type = #tpu.core_type<tc>, window_params = [{transform_indices = @transform_0, window_bounds = array<i64: 8, 128>}, {transform_indices = @transform_1, window_bounds = array<i64: 8, 128>}, {transform_indices = @transform_2, window_bounds = array<i64: 8, 128>}]} {
    %c0 = arith.constant 0 : index
    %0 = memref.load %arg1[%c0] : memref<3xf32, #tpu.memory_space<smem>>
    %c1 = arith.constant 1 : index
    %1 = memref.load %arg1[%c1] : memref<3xf32, #tpu.memory_space<smem>>
    %c2 = arith.constant 2 : index
    %2 = memref.load %arg1[%c2] : memref<3xf32, #tpu.memory_space<smem>>
    %c0_0 = arith.constant 0 : index
    %c0_1 = arith.constant 0 : index
    %3 = vector.load %arg2[%c0_0, %c0_1] : memref<8x128xf32, #tpu.memory_space<vmem>>, vector<8x128xf32>
    %cst = arith.constant 0.0174532924 : f32
    %4 = vector.broadcast %cst : f32 to vector<8x128xf32>
    %5 = arith.mulf %3, %4 : vector<8x128xf32>
    %6 = vector.broadcast %1 : f32 to vector<8x128xf32>
    %7 = arith.subf %5, %6 : vector<8x128xf32>
    %8 = math.cos %7 : vector<8x128xf32>
    %cst_2 = arith.constant 2.000000e+00 : f32
    %9 = vector.broadcast %cst_2 : f32 to vector<8x128xf32>
    %10 = arith.mulf %9, %8 : vector<8x128xf32>
    %11 = arith.mulf %8, %8 : vector<8x128xf32>
    %12 = arith.mulf %10, %11 : vector<8x128xf32>
    %13 = arith.subf %12, %8 : vector<8x128xf32>
    %14 = vector.broadcast %2 : f32 to vector<8x128xf32>
    %15 = arith.addf %13, %14 : vector<8x128xf32>
    %16 = math.absf %15 : vector<8x128xf32>
    %17 = vector.broadcast %0 : f32 to vector<8x128xf32>
    %18 = arith.mulf %17, %16 : vector<8x128xf32>
    %c0_3 = arith.constant 0 : index
    %c0_4 = arith.constant 0 : index
    %19 = vector.load %arg3[%c0_3, %c0_4] : memref<8x128xf32, #tpu.memory_space<vmem>>, vector<8x128xf32>
    tpu.vector_store %arg3[%c0_3, %c0_4], %18 {strides = array<i32>} : memref<8x128xf32, #tpu.memory_space<vmem>>, vector<8x128xf32>,
    %20 = vector.broadcast %0 : f32 to vector<8x128xf32>
    %21 = arith.mulf %20, %13 : vector<8x128xf32>
    %22 = vector.broadcast %2 : f32 to vector<8x128xf32>
    %23 = arith.addf %21, %22 : vector<8x128xf32>
    %c0_5 = arith.constant 0 : index
    %c0_6 = arith.constant 0 : index
    %24 = vector.load %arg4[%c0_5, %c0_6] : memref<8x128xf32, #tpu.memory_space<vmem>>, vector<8x128xf32>
    tpu.vector_store %arg4[%c0_5, %c0_6], %23 {strides = array<i32>} : memref<8x128xf32, #tpu.memory_space<vmem>>, vector<8x128xf32>,
    return
  }
  func.func @transform_0(%arg0: i32, %arg1: memref<3xf32, #tpu.memory_space<smem>>) -> (i32, i32) {
    %c0_i32 = arith.constant 0 : i32
    %c0_i32_0 = arith.constant 0 : i32
    return %arg0, %c0_i32 : i32, i32
  }
  func.func @transform_1(%arg0: i32, %arg1: memref<3xf32, #tpu.memory_space<smem>>) -> (i32, i32) {
    %c0_i32 = arith.constant 0 : i32
    %c0_i32_0 = arith.constant 0 : i32
    return %arg0, %c0_i32 : i32, i32
  }
  func.func @transform_2(%arg0: i32, %arg1: memref<3xf32, #tpu.memory_space<smem>>) -> (i32, i32) {
    %c0_i32 = arith.constant 0 : i32
    %c0_i32_0 = arith.constant 0 : i32
    return %arg0, %c0_i32 : i32, i32
  }
}

</mosaic_0001>

<bundles_post_ra>
// kernel: tpu_custom_call.1
= control target key start
LH: loop header
LB: loop body
LE: loop exit
PB: predicated region body
PF: predicated region fallthrough
CT: control target
= control target key end

     0   :  { %s923_s0 = inlined_call_operand.hbm [shape: f32[3], index: 0, kind: input, shape index: {}]   ;;  %s924_s1 = inlined_call_operand.hbm [shape: f32[16,128], index: 1, kind: input, shape index: {}]   ;;  %s925_s2 = inlined_call_operand.hbm [shape: f32[16,128], index: 2, kind: output, shape index: {0}]   ;;  %s926_s3 = inlined_call_operand.hbm [shape: f32[16,128], index: 3, kind: output, shape index: {1}]  }
   0x1   :  { %s519_s14 = scalar_lea.hbm %s923_s0, 16 }
   0x2   :  { %p520_p0 = scmp.ne.s32.totalorder %s923_s0, %s519_s14  ;;  %p523_p1 = scmp.lt.u32.totalorder %s519_s14, %s923_s0 }
   0x4   :  { %p525_p2 = pnand %p523_p1, %p520_p0 }
   0x6   :  { %528 = shalt.err (!%p525_p2)  }
   0x7   :  { %s661_s19 = smov [#allocation3]  }
   0x8   :  { %10 = dma.hbm_to_smem %s923_s0, 16, %s661_s19, [#allocation2] }
   0x9   :  { %631 = dma.done.wait [#allocation2], 16 }
   0xa   :  { %632 = vsyncadd [#allocation2], 4294967280 }
   0xb   :  { %12 = sfence }
   0xc   :  { %13 = vsyncpa [#allocation5], 0 }
   0xd   :  { %15 = vsyncpa [#allocation5 + $0x1], 0 }
   0xe   :  { %16 = vsyncpa [#allocation6], 0 }
   0xf   :  { %18 = vsyncpa [#allocation6 + $0x1], 0 }
  0x10   :  { %19 = vsyncpa [#allocation9], 0 }
  0x11   :  { %21 = vsyncpa [#allocation9 + $0x1], 0  ;;  %s703_s22 = smov 0   ;;  %s705_s23 = smov 0  }
  0x12   :  { %s707_s24 = smov 0   ;;  %s709_s25 = smov 0  }
  0x13 LB: > { %s724_s0 = sadd.s32 4294967295, %s659_s25   ;;  %s432_s26 = sadd.s32 4294967294, %s659_s25   ;;  %s659_s25 = sphi %s709_s25, %s941_s25   ;;  %s655_s24 = sphi %s707_s24, %s940_s24   ;;  %s651_s23 = sphi %s705_s23, %s939_s23   ;;  %s647_s22 = sphi %s703_s22, %s938_s22  }
  0x14   : > { %s728_s27 = sadd.s32 1, %s659_s25   ;;  %s34_s28 = sadd.s32 1, %s655_s24 }
  0x15   : > { %s31_s29 = ssub.s32 %s659_s25, %s728_s27  ;;  %p41_p3 = scmp.ne.s32.totalorder %s655_s24, %s651_s23 }
  0x16   : > { %p32_p4 = scmp.eq.s32.totalorder %s31_s29, 0  ;;  %p42_p5 = scmp.eq.s32.totalorder %s659_s25, 0 }
  0x17   : > { %p47_p6 = scmp.ne.s32.totalorder %s651_s23, %s647_s22  ;;  %p48_p7 = scmp.eq.s32.totalorder %s724_s0, 0 }
  0x18   : > { %s740_s30 = scalar_select %p32_p4, %s655_s24, %s34_s28  }
  0x19   : > { %p742_p8 = por %p42_p5, %p41_p3  ;;  %p746_p9 = por %p48_p7, %p47_p6 }
  0x1a   : > { %p71_p10 = scmp.eq.s32.totalorder %s724_s0, 1  ;;  %p77_p11 = scmp.eq.s32.totalorder %s432_s26, 1 }
  0x1b   : > { %p474_p13 = scmp.lt.s32.totalorder %s659_s25, 2  ;;  %s123_s8 = sand.u32 1, %s655_s24  }
  0x1c   : > { %p753_p0 = por %p71_p10, %p41_p3  ;;  %p757_p1 = por %p77_p11, %p47_p6 }
  0x1d   : > { %s436_s9 = sshll.u32 %s659_s25, 7  ;;  %s435_s10 = sshll.u32 %s123_s8, 3 }
  0x1e   : > { %s930_s6 = scalar_select %p753_p0, 1, 0 }
  0x1f   : > { %s931_s7 = scalar_select %p757_p1, 1, 0 }
  0x20   : > { %s766_s13 = scalar_lea.hbm %s924_s1, %s436_s9  ;;  %s127_s14 = scalar_lea.vmem [#allocation4], %s435_s10 }
  0x21   : > { %s134_s15 = sshll.u32 %s127_s14, 4  ;;  %p770_p2 = pnand %p474_p13, %p742_p8  ;;  %s774_s15 = int_to_ptr.vmem [resolvable:$true] %s134_s15 }
  0x22   : > { %s124_s17 = scalar_lea.sflag [#allocation5], %s123_s8  ;;  %s529_s18 = scalar_lea.hbm %s766_s13, 128 }
  0x23   : > { %p530_p5 = scmp.ne.s32.totalorder %s766_s13, %s529_s18  ;;  %p531_p6 = pneg %p770_p2 }
  0x24   : > { %s534_s21 = scalar_lea.hbm %s924_s1, 256  ;;  %p535_p8 = scmp.lt.u32.totalorder %s766_s13, %s924_s1 }
  0x25   : > { %p532_p7 = pnand %p531_p6, %p530_p5  ;;  %p536_p11 = scmp.lt.u32.totalorder %s534_s21, %s529_s18 }
  0x26   : > { %p538_p12 = scmp.lt.u32.totalorder %s529_s18, %s766_s13 }
  0x27   : > { %p533_p10 = pneg %p532_p7  ;;  %p537_p13 = por %p536_p11, %p535_p8 }
  0x29   : > { %p539_p3 = por %p538_p12, %p537_p13 }
  0x2b   : > { %p540_p4 = pnand %p539_p3, %p533_p10 }
  0x2d   : > { %543 = shalt.err (!%p540_p4)
}
  0x2e   : > { %s544_s29 = scalar_lea.vmem %s774_s15, 128  ;;  %s662_s4 = smov [#allocation4]  }
  0x2f   : > { %p545_p5 = scmp.ne.s32.totalorder %s774_s15, %s544_s29  ;;  %s549_s8 = sshll.u32 %s662_s4, 4  ;;  %s550_s8 = int_to_ptr.vmem [resolvable:$false] %s549_s8 }
  0x30   : > { %s551_s9 = scalar_lea.vmem %s550_s8, 256  ;;  %p552_p0 = scmp.lt.s32.totalorder %s774_s15, %s550_s8 }
  0x31   : > { %p547_p7 = pnand %p545_p5, %p531_p6  ;;  %p553_p8 = scmp.lt.s32.totalorder %s551_s9, %s544_s29 }
  0x33   : > { %p548_p1 = pneg %p547_p7  ;;  %p554_p11 = por %p553_p8, %p552_p0 }
  0x35   : > { %p555_p12 = pnand %p554_p11, %p548_p1 }
  0x37   : > { %558 = shalt.err (!%p555_p12)
}
  0x38   : > { %466 = dma.hbm_to_vmem [thread:$0]  (!%p770_p2), %s766_s13, 128, %s774_s15, %s124_s17  }
  0x39   : > { %p933_p3 = scmp.lt.s32.totalorder %s659_s25, 3  ;;  %p934_p4 = scmp.ge.s32.totalorder %s659_s25, 1 }
  0x3b   : > { %p140_p6 = pnand %p934_p4, %p933_p3 }
  0x3c   : > { %s808_s10 = sand.u32 (!%p140_p6), 1, %s651_s23  }
  0x3d   : > { %143 = sbr.rel (%p140_p6) target bundleno = 205 (0xcd), region = 24  ;;  %s811_s11 = sshll.u32 (!%p140_p6), %s808_s10, 3 }
  0x3e   : > { %s146_s12 = scalar_lea.sflag (!%p140_p6), [#allocation5], %s808_s10  ;;  %s149_s14 = scalar_lea.vmem (!%p140_p6), [#allocation4], %s811_s11 }
  0x44   : > { %634 = dma.done.wait (%p746_p9), %s146_s12, 128  }
  0x45   : > { %636 = vsyncadd (%p746_p9), %s146_s12, 4294967168  ;;  %s441_s13 = sld [smem:[#allocation3 + $0x1]]  ;;  %v178_v0 = vld [vmem:[%s149_s14] sm:$0xff]  ;;  %v663_v15 = vmov 683565275   ;;  %s175_s5 = sld [smem:[#allocation3]] }
  0x46   : > { %v179_v2 = vmul.f32 0.017453292, %v178_v0  ;;  %v664_v17 = vmov 2475754826   ;;  %v665_v19 = vmov 2131351028  }
  0x47   : > { %v666_v21 = vmov 2102212464   ;;  %v667_v23 = vmov 920167782   ;;  %v668_v30 = vmov 1326507024  }
  0x48   : > { %s442_s15 = sld [smem:[#allocation3 + $0x2]]  ;;  %s174_s16 = scalar_lea.vmem [#allocation8], %s811_s11 }
  0x49   : > { %s330_s17 = sshll.u32 %s174_s16, 4  ;;  %s449_s18 = sshll.u32 %s724_s0, 7  ;;  %s845_s17 = int_to_ptr.vmem [resolvable:$true] %s330_s17 }
  0x4a   : > { %s167_s19 = scalar_lea.vmem [#allocation7], %s811_s11  ;;  %s850_s28 = scalar_lea.hbm %s926_s3, %s449_s18 }
  0x4b   : > { %v180_v1 = vstv %s441_s13  ;;  %s317_s20 = sshll.u32 %s167_s19, 4  ;;  %s857_s4 = scalar_lea.hbm %s925_s2, %s449_s18  ;;  %s852_s20 = int_to_ptr.vmem [resolvable:$true] %s317_s20 }
  0x4c   : > { %v819_v3 = vsub.f32 %v179_v2, %v180_v1  ;;  %s304_s8 = scalar_lea.sflag [#allocation9], %s808_s10  ;;  %s559_s9 = scalar_lea.vmem %s845_s17, 128 }
  0x4d   : > { %p560_p9 = scmp.ne.s32.totalorder %s845_s17, %s559_s9  ;;  %p935_p0 = scmp.ne.s32.totalorder %s930_s6, 0 }
  0x4e   : > { %v185_v4 = vand.u32 2139095040, %v819_v3  ;;  %v182_v6 = vand.u32 2147483647, %v819_v3  ;;  %vm184_vm7 = vcmp.lt.s32.totalorder %v819_v3, 0  ;;  %vm274_vm12 = vweird.f32 %v819_v3  ;;  %s669_s12 = smov [#allocation8]  }
  0x4f   : > { %p561_p1 = pnand %p560_p9, %p935_p0  ;;  %s563_s14 = sshll.u32 %s669_s12, 4  ;;  %s564_s14 = int_to_ptr.vmem [resolvable:$false] %s563_s14 }
  0x50   : > { %v186_v5 = vshrl.u32 %v185_v4, 23  ;;  %v189_v9 = vand.u32 8388607, %v182_v6  ;;  %vm183_vm8 = vcmp.le.f32.partialorder %v182_v6, 0.7853982  ;;  %s565_s13 = scalar_lea.vmem %s564_s14, 256  ;;  %p566_p10 = scmp.lt.s32.totalorder %s845_s17, %s564_s14 }
  0x51   : > { %p562_p2 = pneg %p561_p1  ;;  %p567_p13 = scmp.lt.s32.totalorder %s565_s13, %s559_s9 }
  0x52   : > { %v443_v7 = vadd.s32 4294967169, %v186_v5  ;;  %v190_v13 = vor.u32 8388608, %v189_v9 }
  0x53   : > { %p568_p5 = por %p567_p13, %p566_p10 }
  0x54   : > { %v192_v8 = vadd.s32 1, %v443_v7  ;;  %v230_v32 = vshll.u32 %v190_v13, 8 }
  0x55   : > { %p569_p7 = pnand %p568_p5, %p562_p2 }
  0x56   : > { %vm193_vm0 = vcmp.gt.s32.totalorder %v192_v8, 0 }
  0x57   : > { %v194_v10 = vsel %vm193_vm0, %v192_v8, 0 }
  0x58   : > { %v196_v11 = vand.u32 31, %v194_v10  ;;  %v195_v12 = vshrl.u32 %v194_v10, 5 }
  0x5a   : > { %v197_v14 = vsub.s32 32, %v196_v11  ;;  %v199_v16 = vshll.u32 %v663_v15, %v196_v11  ;;  %v202_v18 = vshll.u32 %v664_v17, %v196_v11  ;;  %v205_v20 = vshll.u32 %v665_v19, %v196_v11 }
  0x5b   : > { %v208_v22 = vshll.u32 %v666_v21, %v196_v11  ;;  %v211_v24 = vshll.u32 %v667_v23, %v196_v11  ;;  %vm214_vm1 = vcmp.lt.s32.totalorder %v195_v12, 1  ;;  %vm217_vm2 = vcmp.lt.s32.totalorder %v195_v12, 4 }
  0x5c   : > { %v198_v25 = vshrl.u32 %v663_v15, %v197_v14  ;;  %v200_v26 = vshrl.u32 %v664_v17, %v197_v14  ;;  %v203_v27 = vshrl.u32 %v665_v19, %v197_v14  ;;  %v206_v28 = vshrl.u32 %v666_v21, %v197_v14 }
  0x5d   : > { %v209_v29 = vshrl.u32 %v667_v23, %v197_v14  ;;  %v212_v31 = vshrl.u32 %v668_v30, %v197_v14  ;;  %vm215_vm3 = vcmp.lt.s32.totalorder %v195_v12, 2  ;;  %vm216_vm4 = vcmp.lt.s32.totalorder %v195_v12, 3 }
  0x5e   : > { %v201_v33 = vor.u32 %v200_v26, %v199_v16  ;;  %v204_v34 = vor.u32 %v203_v27, %v202_v18  ;;  %v207_v35 = vor.u32 %v206_v28, %v205_v20 }
  0x5f   : > { %v210_v36 = vor.u32 %v209_v29, %v208_v22  ;;  %v213_v37 = vor.u32 %v212_v31, %v211_v24 }
  0x60   : > { %v218_v38 = vsel %vm214_vm1, %v198_v25, %v201_v33  ;;  %v219_v39 = vsel %vm217_vm2, %v207_v35, 2102212464  ;;  %v222_v40 = vsel %vm214_vm1, %v201_v33, %v204_v34  ;;  %v226_v41 = vsel %vm214_vm1, %v204_v34, %v207_v35 }
  0x61   : > { %v220_v42 = vsel %vm216_vm4, %v204_v34, %v219_v39  ;;  %v223_v43 = vsel %vm217_vm2, %v210_v36, 920167782  ;;  %v227_v44 = vsel %vm217_vm2, %v213_v37, 1326507024  ;;  %v289_v34 = vstv %s442_s15 }
  0x62   : > { %v224_v45 = vsel %vm216_vm4, %v207_v35, %v223_v43  ;;  %v228_v46 = vsel %vm216_vm4, %v210_v36, %v227_v44  ;;  %v221_v47 = vsel %vm215_vm3, %v218_v38, %v220_v42  ;;  %v292_v35 = vstv %s175_s5 }
  0x63   : > { %v225_v48 = vsel %vm215_vm3, %v222_v40, %v224_v45  ;;  %v229_v49 = vsel %vm215_vm3, %v226_v41, %v228_v46  ;;  %v237_v54 = vmul.u32 %v230_v32, %v221_v47 }
  0x64   : > { %v825_v50 = vmul.u32.u64.low %v230_v32, %v229_v49  ;;  %v826_v51 = vmul.u32.u64.high %v230_v32, %v229_v49, %v825_v50  ;;  %v828_v52 = vmul.u32.u64.low %v230_v32, %v225_v48  ;;  %v829_v53 = vmul.u32.u64.high %v230_v32, %v225_v48, %v828_v52 }
  0x66   : > { %vm239_vm5 = vc.u32 %v826_v51, %v828_v52  ;;  %v240_v55 = vadd.s32 1, %v829_v53  ;;  %v238_v2 = vadd.s32 %v828_v52, %v826_v51 }
  0x68   : > { %v241_v56 = vsel %vm239_vm5, %v240_v55, %v829_v53 }
  0x69   : > { %v242_v57 = vadd.s32 %v241_v56, %v237_v54 }
  0x6b   : > { %v243_v58 = vadd.s32 536870912, %v242_v57 }
  0x6d   : > { %v244_v59 = vshrl.u32 %v243_v58, 30 }
  0x6f   : > { %v245_v60 = vshll.u32 %v244_v59, 30  ;;  %v268_v18 = vsub.s32 4, %v244_v59 }
  0x71   : > { %v246_v61 = vsub.s32 %v242_v57, %v245_v60  ;;  %v269_v21 = vsel %vm184_vm7, %v268_v18, %v244_v59 }
  0x72   : > { %v271_v22 = vsel %vm183_vm8, 0, %v269_v21 }
  0x73   : > { %v248_v62 = vsub.s32 0, %v246_v61  ;;  %v275_v23 = vand.u32 3, %v271_v22 }
  0x75   : > { %v444_v63 = vmin.u32 %v248_v62, %v246_v61  ;;  %vm280_vm9 = vcmp.eq.s32.totalorder %v275_v23, 2  ;;  %vm277_vm10 = vcmp.eq.s32.totalorder %v275_v23, 0  ;;  %vm276_vm11 = vcmp.lt.s32.totalorder %v275_v23, 2 }
  0x77   : > { %v250_v0 = vclz %v444_v63 }
  0x79   : > { %v445_v1 = vadd.s32 4294967294, %v250_v0 }
  0x7b   : > { %vm446_vm6 = vcmp.lt.s32.totalorder %v445_v1, 0 }
  0x7c   : > { %v253_v4 = vsel %vm446_vm6, 0, %v445_v1 }
  0x7d   : > { %v254_v5 = vsub.s32 32, %v253_v4  ;;  %v255_v7 = vshll.u32 %v246_v61, %v253_v4  ;;  %v258_v8 = vsub.s32 4294967266, %v253_v4 }
  0x7f   : > { %v256_v9 = vshrl.u32 %v238_v2, %v254_v5  ;;  %v259_v10 = vadd.s32 127, %v258_v8 }
  0x81   : > { %v257_v11 = vor.u32 %v256_v9, %v255_v7  ;;  %v260_v12 = vshll.u32 %v259_v10, 23 }
  0x83   : > { %v261_v13 = vor.u32 4788187, %v260_v12  ;;  %v264_v14 = vcvt.s32.f32 %v257_v11 }
  0x85   : > { %v262_v15 = vand.u32 2147483647, %v261_v13 }
  0x87   : > { %v265_v16 = vmul.f32 %v264_v14, %v262_v15 }
  0x89   : > { %v266_v17 = vxor.u32 2147483648, %v265_v16 }
  0x8b   : > { %v267_v19 = vsel %vm184_vm7, %v266_v17, %v265_v16 }
  0x8c   : > { %v270_v20 = vsel %vm183_vm8, %v819_v3, %v267_v19 }
  0x8d   : > { %515 = vcosq.f32 %v270_v20 }
  0x8e   : > { %517 = vsinq.f32 %v270_v20 }
  0x97   : > { %v516_v24 = vpop.eup %515 }
  0x98   : > { %v518_v25 = vpop.eup %517  ;;  %v281_v26 = vxor.u32 2147483648, %v516_v24 }
  0x99   : > { %v278_v6 = vxor.u32 2147483648, %v518_v25 }
  0x9a   : > { %v282_v27 = vsel %vm280_vm9, %v281_v26, %v518_v25 }
  0x9b   : > { %v279_v28 = vsel %vm277_vm10, %v516_v24, %v278_v6 }
  0x9c   : > { %v283_v29 = vsel %vm276_vm11, %v279_v28, %v282_v27 }
  0x9d   : > { %v284_v30 = vsel %vm274_vm12, nan, %v283_v29 }
  0x9e   : > { %v285_v31 = vmul.f32 2.0, %v284_v30  ;;  %v286_v32 = vmul.f32 %v284_v30, %v284_v30 }
  0xa0   : > { %v287_v33 = vmul.f32 %v286_v32, %v285_v31 }
  0xa2   : > { %v288_v36 = vsub.f32 %v287_v33, %v284_v30 }
  0xa4   : > { %v290_v37 = vadd.f32 %v289_v34, %v288_v36  ;;  %v295_v3 = vmul.f32 %v292_v35, %v288_v36 }
  0xa6   : > { %v291_v38 = vand.u32 2147483647, %v290_v37  ;;  %v296_v39 = vadd.f32 %v295_v3, %v289_v34 }
  0xa8   : > { %v293_v40 = vmul.f32 %v292_v35, %v291_v38  ;;  %297 = vst [vmem:[%s174_s16] sm:$0xff] %v296_v39 }
  0xa9   : > { %572 = shalt.err (!%p569_p7)
}
  0xaa   : > { %s573_s5 = scalar_lea.hbm %s850_s28, 128  ;;  %s577_s18 = scalar_lea.hbm %s926_s3, 256 }
  0xab   : > { %p574_p8 = scmp.ne.s32.totalorder %s850_s28, %s573_s5  ;;  %p578_p3 = scmp.lt.u32.totalorder %s850_s28, %s926_s3 }
  0xac   : > { %p579_p4 = scmp.lt.u32.totalorder %s577_s18, %s573_s5  ;;  %p581_p9 = scmp.lt.u32.totalorder %s573_s5, %s850_s28 }
  0xad   : > { %p575_p11 = pnand %p574_p8, %p935_p0 }
  0xae   : > { %p580_p6 = por %p579_p4, %p578_p3 }
  0xaf   : > { %p576_p12 = pneg %p575_p11 }
  0xb0   : > { %p582_p1 = por %p581_p9, %p580_p6 }
  0xb2   : > { %p583_p2 = pnand %p582_p1, %p576_p12 }
  0xb4   : > { %586 = shalt.err (!%p583_p2)
}
  0xb5   : > { %460 = dma.vmem_to_hbm [thread:$0]  (%p935_p0), %s845_s17, 128, %s850_s28, %s304_s8   ;;  %294 = vst [vmem:[%s167_s19] sm:$0xff] %v293_v40 }
  0xb6   : > { %s299_s0 = scalar_lea.sflag [#allocation6], %s808_s10  ;;  %s587_s29 = scalar_lea.vmem %s852_s20, 128 }
  0xb7   : > { %p588_p10 = scmp.ne.s32.totalorder %s852_s20, %s587_s29  ;;  %s670_s9 = smov [#allocation7]  }
  0xb8   : > { %s591_s12 = sshll.u32 %s670_s9, 4  ;;  %s592_s12 = int_to_ptr.vmem [resolvable:$false] %s591_s12 }
  0xb9   : > { %p589_p13 = pnand %p588_p10, %p935_p0  ;;  %s593_s14 = scalar_lea.vmem %s592_s12, 256 }
  0xba   : > { %p594_p7 = scmp.lt.s32.totalorder %s852_s20, %s592_s12  ;;  %p595_p8 = scmp.lt.s32.totalorder %s593_s14, %s587_s29 }
  0xbb   : > { %p590_p5 = pneg %p589_p13 }
  0xbc   : > { %p596_p11 = por %p595_p8, %p594_p7 }
  0xbe   : > { %p597_p12 = pnand %p596_p11, %p590_p5 }
  0xc0   : > { %600 = shalt.err (!%p597_p12)
}
  0xc1   : > { %s601_s10 = scalar_lea.hbm %s857_s4, 128  ;;  %s605_s19 = scalar_lea.hbm %s925_s2, 256 }
  0xc2   : > { %p602_p3 = scmp.ne.s32.totalorder %s857_s4, %s601_s10  ;;  %p606_p9 = scmp.lt.u32.totalorder %s857_s4, %s925_s2 }
  0xc3   : > { %p607_p1 = scmp.lt.u32.totalorder %s605_s19, %s601_s10  ;;  %p609_p10 = scmp.lt.u32.totalorder %s601_s10, %s857_s4 }
  0xc4   : > { %p603_p4 = pnand %p602_p3, %p935_p0 }
  0xc5   : > { %p608_p2 = por %p607_p1, %p606_p9 }
  0xc6   : > { %p604_p6 = pneg %p603_p4 }
  0xc7   : > { %p610_p13 = por %p609_p10, %p608_p2 }
  0xc9   : > { %p611_p5 = pnand %p610_p13, %p604_p6 }
  0xcb   : > { %614 = shalt.err (!%p611_p5)
}
  0xcc   : > { %459 = dma.vmem_to_hbm [thread:$0]  (%p935_p0), %s852_s20, 128, %s857_s4, %s299_s0  }
  0xcd PF: > { %s342_s13 = sand.u32 1, %s647_s22   ;;  %p936_p7 = scmp.ne.s32.totalorder %s931_s7, 0 }
  0xce   : > { %p937_p8 = scmp.ge.s32.totalorder %s659_s25, 2  ;;  %s343_s5 = scalar_lea.sflag [#allocation6], %s342_s13 }
  0xd0   : > { %p468_p11 = pnand %p937_p8, %p936_p7 }
  0xd2   : > { %638 = dma.done.wait (!%p468_p11), %s343_s5, 128  }
  0xd3   : > { %640 = vsyncadd (!%p468_p11), %s343_s5, 4294967168  ;;  %s352_s15 = scalar_lea.sflag [#allocation9], %s342_s13 }
  0xd4   : > { %642 = dma.done.wait (!%p468_p11), %s352_s15, 128  }
  0xd5   : > { %644 = vsyncadd (!%p468_p11), %s352_s15, 4294967168  ;;  %p24_p0 = scmp.ge.s32.totalorder %s728_s27, 4   ;;  %s938_s22 = smov %s651_s23 }
  0xd6   : > { %s939_s23 = smov %s655_s24  ;;  %s940_s24 = smov %s740_s30 }
  0xd7   : > { %s941_s25 = smov %s728_s27  ;;  %26 = sbr.rel (!%p24_p0) target bundleno = 19 (0x13), region = 86 }
  0xde   :  { %357 = vsyncpa [#allocation5], 1 }
  0xdf   :  { %359 = vsyncpa [#allocation5 + $0x1], 1 }
  0xe0   :  { %360 = vsyncpa [#allocation6], 1 }
  0xe1   :  { %362 = vsyncpa [#allocation6 + $0x1], 1 }
  0xe2   :  { %363 = vsyncpa [#allocation9], 1 }
  0xe3   :  { %365 = vsyncpa [#allocation9 + $0x1], 1 }

</bundles_post_ra>
